<compile_context>
chip_gen: v7x
topology: tpu7x:2x2x1
jax: 0.10.0
libtpu: 0.0.40
codegen_flags: <defaults>
</compile_context>

<pallas_src>
import jax
import jax.numpy as jnp
from jax.experimental import pallas as pl
from jax.experimental.pallas import tpu as pltpu

_LANES = 128      # vreg lane width
_SUBLANES = 8     # f32 sublanes per vreg


def fused_affine_kernel(wb_ref, xt_ref, ot_ref):
    """One batch tile of  y = x @ w_fused + b_fused  as VPU broadcast-FMAs.

    wb_ref : SMEM [3]              [w_fused0, w_fused1, b_fused]
    xt_ref : VMEM [2, TR, 128]     feature axis leading; batch dense on sublanes+lanes
    ot_ref : VMEM [TR, 128]        fully dense output tile (unmasked vst)
    """
    x0 = xt_ref[0]                                  # [TR, 128]
    x1 = xt_ref[1]                                  # [TR, 128]
    ot_ref[...] = x0 * wb_ref[0] + x1 * wb_ref[1] + wb_ref[2]


def _pick_tile_rows(rows_min, target_rows, min_steps=4):
    """Pick a tile (in rows of 128 lanes): big tiles, but keep the pipeline full."""
    rows_min = max(rows_min, _SUBLANES)
    if rows_min <= target_rows:
        # Only split small/medium batches if each tile still clears the per-step-overhead knee
        # (>= 256 rows ~= 32K elements per step).
        if rows_min >= min_steps * 256:
            return max(_SUBLANES, (rows_min // min_steps) // _SUBLANES * _SUBLANES)
        return rows_min
    # Large batch: big tiles, but >= min_steps grid steps so double-buffering overlaps
    # (and both v7x TensorCores get work).
    tr = target_rows
    while rows_min // tr < min_steps and tr > _SUBLANES:
        tr = max(_SUBLANES, tr // 2)
    return tr


def circle_model_v1(x, w1, b1, w2, b2, *, target_tile_rows=1024, min_pallas_batch=2048):
    """x: [B, 2]; w1: [2,5]; b1: [1,5]; w2: [5,1]; b2: [1,1]  ->  [B, 1] (float32)."""
    B = x.shape[0]
    xf = x.astype(jnp.float32)

    # Fuse the two affine layers (exact algebraic reassociation; no nonlinearity between them).
    w_fused = jnp.dot(w1.astype(jnp.float32), w2.astype(jnp.float32),
                      preferred_element_type=jnp.float32).reshape(-1)                  # [2]
    b_fused = (jnp.dot(b1.astype(jnp.float32), w2.astype(jnp.float32),
                       preferred_element_type=jnp.float32) + b2).reshape(-1)           # [1]

    if B < min_pallas_batch:
        # Small-batch fast path: XLA fuses this tiny affine for free; skipping the Pallas
        # launch / pad / transpose is the win here.
        return xf @ w_fused.reshape(2, 1) + b_fused

    # ---- Pallas path: sublane+lane dense batch layout -------------------------------------
    rows_min = pl.cdiv(B, _LANES)
    rows_min = pl.cdiv(rows_min, _SUBLANES) * _SUBLANES          # multiple of 8 sublanes
    tile_rows = _pick_tile_rows(rows_min, target_tile_rows)
    rows = pl.cdiv(rows_min, tile_rows) * tile_rows              # rows % tile_rows == 0
    padded_b = rows * _LANES

    # [B,2] -> [padded_b,2] -> [2, rows, 128]: feature axis leading, batch dense in each tile.
    x_pad = jnp.pad(xf, ((0, padded_b - B), (0, 0)))
    xt = x_pad.T.reshape(2, rows, _LANES)

    wb = jnp.concatenate([w_fused, b_fused])                     # [3] SMEM scalars

    grid = (rows // tile_rows,)
    out = pl.pallas_call(
        fused_affine_kernel,
        out_shape=jax.ShapeDtypeStruct((rows, _LANES), jnp.float32),
        grid_spec=pltpu.PrefetchScalarGridSpec(
            num_scalar_prefetch=0,
            grid=grid,
            in_specs=[
                pl.BlockSpec(memory_space=pltpu.MemorySpace.SMEM),              # fused w/b scalars
                pl.BlockSpec((2, tile_rows, _LANES), lambda i: (0, i, 0)),      # x tile
            ],
            out_specs=pl.BlockSpec((tile_rows, _LANES), lambda i: (i, 0)),      # dense y tile
        ),
        compiler_params=pltpu.CompilerParams(
            dimension_semantics=("parallel",),   # megacore: split batch tiles across TCs
        ),
    )(wb, xt)

    # Back to the module's [B, 1] layout (padded lanes hold b_fused and are sliced off here).
    return out.reshape(padded_b)[:B].reshape(B, 1)


def init_params(key):
    # Deterministic synthetic init (mimics PyTorch's uniform(-1/sqrt(fan_in), 1/sqrt(fan_in))).
    k1, k2, k3, k4 = jax.random.split(key, 4)
    bound1 = 1.0 / jnp.sqrt(2.0)
    bound2 = 1.0 / jnp.sqrt(5.0)
    w1 = jax.random.uniform(k1, (2, 5), jnp.float32, -bound1, bound1)   # layer_1.weight.T
    b1 = jax.random.uniform(k2, (1, 5), jnp.float32, -bound1, bound1)   # layer_1.bias
    w2 = jax.random.uniform(k3, (5, 1), jnp.float32, -bound2, bound2)   # layer_2.weight.T
    b2 = jax.random.uniform(k4, (1, 1), jnp.float32, -bound2, bound2)   # layer_2.bias
    return w1, b1, w2, b2


if __name__ == "__main__":
    key = jax.random.PRNGKey(0)
    kx, kp, kx2 = jax.random.split(key, 3)
    w1, b1, w2, b2 = init_params(kp)

    # 1) Pallas path: batch above the fast-path threshold exercises the kernel.
    B_big = 4096
    x_big = jax.random.normal(kx, (B_big, 2), jnp.float32)
    out_big = jax.block_until_ready(circle_model_v1(x_big, w1, b1, w2, b2))
    ref_big = (x_big @ w1 + b1) @ w2 + b2
    assert out_big.shape == (B_big, 1)
    assert jnp.allclose(out_big, ref_big, atol=1e-5, rtol=1e-5)

    # 2) Small-batch fast path (skips the Pallas launch entirely at B=8).
    B_small = 8
    x_small = jax.random.normal(kx2, (B_small, 2), jnp.float32)
    out_small = jax.block_until_ready(circle_model_v1(x_small, w1, b1, w2, b2))
    ref_small = (x_small @ w1 + b1) @ w2 + b2
    assert out_small.shape == (B_small, 1)
    assert jnp.allclose(out_small, ref_small, atol=1e-5, rtol=1e-5)

    print("KERNEL_OK")
</pallas_src>

<mosaic_0001>
module attributes {stable_mosaic.version = 11 : i64} {
  func.func @fused_affine_kernel(%arg0: i32, %arg1: memref<3xf32, #tpu.memory_space<smem>>, %arg2: memref<2x32x128xf32, #tpu.memory_space<vmem>>, %arg3: memref<32x128xf32, #tpu.memory_space<vmem>>) attributes {dimension_semantics = [#tpu.dimension_semantics<parallel>], iteration_bounds = array<i64: 1>, scalar_prefetch = 0 : i64, scratch_operands = 0 : i64, tpu.core_type = #tpu.core_type<tc>, window_params = [{transform_indices = @transform_0, window_bounds = array<i64: 3>}, {transform_indices = @transform_1, window_bounds = array<i64: 2, 32, 128>}, {transform_indices = @transform_2, window_bounds = array<i64: 32, 128>}]} {
    %c0 = arith.constant 0 : index
    %c0_0 = arith.constant 0 : index
    %c0_1 = arith.constant 0 : index
    %0 = vector.load %arg2[%c0, %c0_0, %c0_1] : memref<2x32x128xf32, #tpu.memory_space<vmem>>, vector<1x32x128xf32>
    %1 = vector.shape_cast %0 : vector<1x32x128xf32> to vector<32x128xf32>
    %c1 = arith.constant 1 : index
    %c0_2 = arith.constant 0 : index
    %c0_3 = arith.constant 0 : index
    %2 = vector.load %arg2[%c1, %c0_2, %c0_3] : memref<2x32x128xf32, #tpu.memory_space<vmem>>, vector<1x32x128xf32>
    %3 = vector.shape_cast %2 : vector<1x32x128xf32> to vector<32x128xf32>
    %c0_4 = arith.constant 0 : index
    %4 = memref.load %arg1[%c0_4] : memref<3xf32, #tpu.memory_space<smem>>
    %5 = vector.broadcast %4 : f32 to vector<32x128xf32>
    %6 = arith.mulf %1, %5 : vector<32x128xf32>
    %c1_5 = arith.constant 1 : index
    %7 = memref.load %arg1[%c1_5] : memref<3xf32, #tpu.memory_space<smem>>
    %8 = vector.broadcast %7 : f32 to vector<32x128xf32>
    %9 = arith.mulf %3, %8 : vector<32x128xf32>
    %10 = arith.addf %6, %9 : vector<32x128xf32>
    %c2 = arith.constant 2 : index
    %11 = memref.load %arg1[%c2] : memref<3xf32, #tpu.memory_space<smem>>
    %12 = vector.broadcast %11 : f32 to vector<32x128xf32>
    %13 = arith.addf %10, %12 : vector<32x128xf32>
    %c0_6 = arith.constant 0 : index
    %c0_7 = arith.constant 0 : index
    %14 = vector.load %arg3[%c0_6, %c0_7] : memref<32x128xf32, #tpu.memory_space<vmem>>, vector<32x128xf32>
    tpu.vector_store %arg3[%c0_6, %c0_7], %13 {strides = array<i32>} : memref<32x128xf32, #tpu.memory_space<vmem>>, vector<32x128xf32>,
    return
  }
  func.func @transform_0(%arg0: i32) -> i32 {
    %c0_i32 = arith.constant 0 : i32
    %c0_i32_0 = arith.constant 0 : i32
    return %c0_i32 : i32
  }
  func.func @transform_1(%arg0: i32) -> (i32, i32, i32) {
    %c0_i32 = arith.constant 0 : i32
    %c0_i32_0 = arith.constant 0 : i32
    %c0_i32_1 = arith.constant 0 : i32
    return %c0_i32, %arg0, %c0_i32_0 : i32, i32, i32
  }
  func.func @transform_2(%arg0: i32) -> (i32, i32) {
    %c0_i32 = arith.constant 0 : i32
    %c0_i32_0 = arith.constant 0 : i32
    return %arg0, %c0_i32 : i32, i32
  }
}

</mosaic_0001>

<bundles_post_ra>
// kernel: tpu_custom_call.1
= control target key start
LH: loop header
LB: loop body
LE: loop exit
PB: predicated region body
PF: predicated region fallthrough
CT: control target
= control target key end

     0   :  { %7 = vsyncpa [#allocation5], 0  ;;  %s219_s0 = inlined_call_operand.hbm [shape: f32[3], index: 0, kind: input, shape index: {}]   ;;  %s220_s1 = inlined_call_operand.hbm [shape: f32[2,32,128], index: 1, kind: input, shape index: {}]   ;;  %s221_s2 = inlined_call_operand.hbm [shape: f32[32,128], index: 2, kind: output, shape index: {}]  }
   0x1   :  { %8 = vsyncpa [#allocation3], 0 }
   0x2   :  { %9 = vsyncpa [#allocation4], 0  ;;  %s97_s11 = scalar_lea.hbm %s219_s0, 16 }
   0x3   :  { %p98_p0 = scmp.ne.s32.totalorder %s219_s0, %s97_s11  ;;  %p101_p1 = scmp.lt.u32.totalorder %s97_s11, %s219_s0 }
   0x5   :  { %p103_p2 = pnand %p101_p1, %p98_p0 }
   0x7   :  { %106 = shalt.err (!%p103_p2)
}
   0x8   :  { %s157_s16 = smov [#allocation2]   ;;  %s158_s19 = smov [#allocation6]  }
   0x9   :  { %17 = dma.hbm_to_smem %s219_s0, 16, %s157_s16, [#allocation5]  }
   0xa   :  { %s23_s20 = sshll.u32 %s158_s19, 4  ;;  %s107_s23 = scalar_lea.hbm %s220_s1, 1024  ;;  %s24_s20 = int_to_ptr.vmem [resolvable:$true] %s23_s20 }
   0xb   :  { %p108_p3 = scmp.ne.s32.totalorder %s220_s1, %s107_s23  ;;  %p111_p4 = scmp.lt.u32.totalorder %s107_s23, %s220_s1 }
   0xd   :  { %p113_p5 = pnand %p111_p4, %p108_p3 }
   0xf   :  { %116 = shalt.err (!%p113_p5)
}
  0x10   :  { %s117_s28 = scalar_lea.vmem %s24_s20, 1024  ;;  %p122_p7 = scmp.lt.s32.totalorder %s24_s20, %s24_s20 }
  0x11   :  { %p118_p6 = scmp.ne.s32.totalorder %s24_s20, %s117_s28  ;;  %p123_p8 = scmp.lt.s32.totalorder %s117_s28, %s117_s28 }
  0x13   :  { %p124_p9 = por %p123_p8, %p122_p7 }
  0x15   :  { %p125_p10 = pnand %p124_p9, %p118_p6 }
  0x17   :  { %128 = shalt.err (!%p125_p10)
}
  0x18   :  { %s159_s0 = smov 128   ;;  %s160_s29 = smov 8  }
  0x19   :  { %29 = dma.hbm_to_vmem [thread:$0]  %s220_s1, 1024, %s24_s20, [#allocation3], %s159_s0, %s159_s0, %s160_s29  }
  0x1a   :  { %151 = dma.done.wait [#allocation5], 16  }
  0x1b   :  { %152 = vsyncadd [#allocation5], 4294967280 }
  0x1c   :  { %153 = dma.done.wait [#allocation3], 1024  }
  0x1d   :  { %154 = vsyncadd [#allocation3], 4294966272 }
  0x1e   :  { %36 = sfence }
  0x1f   :  { %s46_s4 = sld [smem:[#allocation2]]  ;;  %s90_s5 = sld [smem:[#allocation2 + $0x1]]  ;;  %v37_v0 = vld [vmem:[#allocation6] sm:$0xff]  ;;  %v38_v2 = vld [vmem:[#allocation6 + $0x8] sm:$0xff]  ;;  %v39_v4 = vld [vmem:[#allocation6 + $0x10] sm:$0xff] }
  0x20   :  { %s91_s6 = sld [smem:[#allocation2 + $0x2]]  ;;  %v42_v1 = vld [vmem:[#allocation6 + $0x20] sm:$0xff]  ;;  %v43_v3 = vld [vmem:[#allocation6 + $0x28] sm:$0xff]  ;;  %v44_v5 = vld [vmem:[#allocation6 + $0x30] sm:$0xff]  ;;  %s161_s1 = smov [#allocation7]  }
  0x21   :  { %v40_v6 = vld [vmem:[#allocation6 + $0x18] sm:$0xff]  ;;  %s77_s7 = sshll.u32 %s161_s1, 4  ;;  %s78_s7 = int_to_ptr.vmem [resolvable:$true] %s77_s7 }
  0x22   :  { %v45_v9 = vld [vmem:[#allocation6 + $0x38] sm:$0xff]  ;;  %s129_s8 = scalar_lea.vmem %s78_s7, 512  ;;  %p134_p12 = scmp.lt.s32.totalorder %s78_s7, %s78_s7 }
  0x23   :  { %p130_p11 = scmp.ne.s32.totalorder %s78_s7, %s129_s8  ;;  %p135_p13 = scmp.lt.s32.totalorder %s129_s8, %s129_s8 }
  0x25   :  { %v47_v7 = vstv %s46_s4  ;;  %v53_v8 = vstv %s90_s5  ;;  %p136_p0 = por %p135_p13, %p134_p12 }
  0x26   :  { %v48_v10 = vmul.f32 %v47_v7, %v37_v0  ;;  %v54_v11 = vmul.f32 %v53_v8, %v42_v1  ;;  %v63_v12 = vstv %s91_s6  ;;  %v49_v13 = vmul.f32 %v47_v7, %v38_v2 }
  0x27   :  { %v55_v14 = vmul.f32 %v53_v8, %v43_v3  ;;  %v50_v15 = vmul.f32 %v47_v7, %v39_v4  ;;  %v56_v16 = vmul.f32 %v53_v8, %v44_v5  ;;  %v51_v17 = vmul.f32 %v47_v7, %v40_v6  ;;  %p137_p1 = pnand %p136_p0, %p130_p11 }
  0x28   :  { %v58_v18 = vadd.f32 %v54_v11, %v48_v10  ;;  %v57_v19 = vmul.f32 %v53_v8, %v45_v9 }
  0x29   :  { %v59_v20 = vadd.f32 %v55_v14, %v49_v13  ;;  %v60_v21 = vadd.f32 %v56_v16, %v50_v15 }
  0x2a   :  { %v64_v22 = vadd.f32 %v63_v12, %v58_v18  ;;  %v61_v23 = vadd.f32 %v57_v19, %v51_v17 }
  0x2b   :  { %v65_v24 = vadd.f32 %v63_v12, %v59_v20  ;;  %v66_v25 = vadd.f32 %v63_v12, %v60_v21 }
  0x2c   :  { %68 = vst [vmem:[#allocation7] sm:$0xff] %v64_v22  ;;  %v67_v26 = vadd.f32 %v63_v12, %v61_v23 }
  0x2d   :  { %69 = vst [vmem:[#allocation7 + $0x8] sm:$0xff] %v65_v24  ;;  %70 = vst [vmem:[#allocation7 + $0x10] sm:$0xff] %v66_v25 }
  0x2e   :  { %71 = vst [vmem:[#allocation7 + $0x18] sm:$0xff] %v67_v26 }
  0x2f   :  { %140 = shalt.err (!%p137_p1)
}
  0x30   :  { %s141_s11 = scalar_lea.hbm %s221_s2, 512 }
  0x31   :  { %p142_p2 = scmp.ne.s32.totalorder %s221_s2, %s141_s11  ;;  %p145_p3 = scmp.lt.u32.totalorder %s141_s11, %s221_s2 }
  0x33   :  { %p147_p4 = pnand %p145_p3, %p142_p2 }
  0x35   :  { %150 = shalt.err (!%p147_p4)
}
  0x36   :  { %83 = dma.vmem_to_hbm [thread:$0]  %s78_s7, 512, %s221_s2, [#allocation4], %s159_s0, %s159_s0, %s160_s29  }
  0x37   :  { %155 = dma.done.wait [#allocation4], 512  }
  0x38   :  { %156 = vsyncadd [#allocation4], 4294966784 }
  0x39   :  { %87 = vsyncpa [#allocation3], 1 }
  0x3a   :  { %88 = vsyncpa [#allocation4], 1 }
  0x3b   :  { %89 = vsyncpa [#allocation5], 1 }

</bundles_post_ra>
